<compile_context>
chip_gen: v5e
topology: v5e:2x2
jax: 0.10.0
libtpu: 0.0.40
codegen_flags: <defaults>
</compile_context>

<pallas_src>
import functools
import math

import jax
import jax.numpy as jnp
from jax.experimental import pallas as pl
from jax.experimental.pallas import tpu as pltpu

C_LANE = 128                      # pad channel dims to the 128-lane vreg width
VMEM_LIMIT = 48 * 1024 * 1024     # fits v5e/v6e (128 MiB) and v7x (64 MiB) with headroom


def _round_up(x, m):
    return ((x + m - 1) // m) * m


def _choose_row_tile(n, block_m):
    """Largest 128-multiple divisor of n <= block_m, preferring an even m-grid (v7x)."""
    cands = [t for t in range(128, n + 1, 128) if n % t == 0 and t <= max(block_m, 128)]
    if not cands:
        return n
    even = [t for t in cands if (n // t) % 2 == 0]
    return max(even) if even else max(cands)


def _choose_col_tile(n, block_k):
    cands = [t for t in range(128, n + 1, 128) if n % t == 0 and t <= max(block_k, 128)]
    return max(cands) if cands else n


# ---------------------------------------------------------------------------
# Pallas kernel: one RGCN-style conv layer, tiled over (row tiles, A-column tiles)
#   relu( dropout( x @ W_root + ((A_counts @ x) / deg) @ W_rel + b ) )
# ---------------------------------------------------------------------------
def _rgcn_body(a_ref, x_ref, xm_ref, invdeg_ref, wroot_ref, wrel_ref, b_ref, seed_ref,
               o_ref, acc_ref, root_ref, *, tk, resident_x, dropout_rate):
    # All program_id binds stay at the top of the body (NOT inside pl.when branches).
    k = pl.program_id(1)
    nk = pl.num_programs(1)
    row0 = pl.program_id(0) * o_ref.shape[0]      # global row offset of this m-tile

    @pl.when(k == 0)
    def _init():
        acc_ref[...] = jnp.zeros_like(acc_ref)
        # Root term once per m-tile on the first k step -> hides under A-tile DMAs.
        root_ref[...] = jnp.dot(xm_ref[...], wroot_ref[...],
                                preferred_element_type=jnp.float32)

    # Partial aggregation: acc[m-tile] += A_counts[m-tile, k-tile] @ X[k-rows]
    # (bf16 operands on the MXU, f32 accumulation).
    if resident_x:                                 # X fully resident in VMEM
        xk = x_ref[pl.ds(k * tk, tk), :]
    else:                                          # X streamed per k tile
        xk = x_ref[...]
    acc_ref[...] += jnp.dot(a_ref[...], xk, preferred_element_type=jnp.float32)

    @pl.when(k == nk - 1)
    def _finalize():
        # Mean aggregation: normalize the f32 accumulator by 1/deg (f32 -> exact-ish).
        agg = (acc_ref[...] * invdeg_ref[...]).astype(jnp.bfloat16)
        out = (jnp.dot(agg, wrel_ref[...], preferred_element_type=jnp.float32)
               + root_ref[...] + b_ref[...])

        if dropout_rate > 0.0:
            # Portable counter-based hash RNG (murmur3-style finalizer). Pure jnp uint32
            # ops: works on TPU Mosaic and in interpret mode; no HBM mask stream.
            rows = jax.lax.broadcasted_iota(jnp.int32, out.shape, 0) + row0
            cols = jax.lax.broadcasted_iota(jnp.int32, out.shape, 1)
            seed_u = seed_ref[...].astype(jnp.uint32)            # (1,1), broadcasts
            h = (rows.astype(jnp.uint32) * jnp.uint32(0x9E3779B1)
                 ^ (cols.astype(jnp.uint32) * jnp.uint32(0x85EBCA77))
                 ^ (seed_u * jnp.uint32(0x27D4EB2F)))
            h = h ^ (h >> 16)
            h = h * jnp.uint32(0x85EBCA6B)
            h = h ^ (h >> 13)
            h = h * jnp.uint32(0xC2B2AE35)
            h = h ^ (h >> 16)
            u = (h >> 9).astype(jnp.int32).astype(jnp.float32) * (1.0 / (1 << 23))
            keep = (u >= jnp.float32(dropout_rate)).astype(jnp.float32)
            out = out * keep * (1.0 / (1.0 - dropout_rate))

        o_ref[...] = jnp.maximum(out, 0.0).astype(o_ref.dtype)    # ReLU, bf16 store


def _rgcn_kernel(a_ref, x_ref, xm_ref, invdeg_ref, wroot_ref, wrel_ref, b_ref,
                 o_ref, acc_ref, root_ref, *, tk, resident_x):
    _rgcn_body(a_ref, x_ref, xm_ref, invdeg_ref, wroot_ref, wrel_ref, b_ref, None,
               o_ref, acc_ref, root_ref, tk=tk, resident_x=resident_x, dropout_rate=0.0)


def _rgcn_dropout_kernel(a_ref, x_ref, xm_ref, invdeg_ref, wroot_ref, wrel_ref, b_ref,
                         seed_ref, o_ref, acc_ref, root_ref,
                         *, tk, resident_x, dropout_rate):
    _rgcn_body(a_ref, x_ref, xm_ref, invdeg_ref, wroot_ref, wrel_ref, b_ref, seed_ref,
               o_ref, acc_ref, root_ref, tk=tk, resident_x=resident_x,
               dropout_rate=dropout_rate)


# ---------------------------------------------------------------------------
# Pallas wrapper
# ---------------------------------------------------------------------------
def rgcn_relu(A, x, inv_deg, w_root, w_rel, b_pad, *, dropout_rate=0.0, seed=None,
              block_m=1024, block_k=2048, x_resident_bytes=8 << 20):
    n, c = x.shape
    assert n % 128 == 0 and c % C_LANE == 0, (n, c)
    assert A.shape == (n, n) and A.dtype == jnp.bfloat16
    assert x.dtype == jnp.bfloat16 and w_root.dtype == jnp.bfloat16

    tm = _choose_row_tile(n, block_m)
    tk = _choose_col_tile(n, block_k)
    grid = (n // tm, n // tk)
    resident = (n * c * 2) <= x_resident_bytes     # whole bf16 X resident in VMEM?

    in_specs = [
        pl.BlockSpec((tm, tk), lambda m, k: (m, k)),                 # A counts (bf16)
        (pl.BlockSpec((n, c), lambda m, k: (0, 0)) if resident       # X: resident once
         else pl.BlockSpec((tk, c), lambda m, k: (k, 0))),           #    or streamed
        pl.BlockSpec((tm, c), lambda m, k: (m, 0)),                  # X rows (root term)
        pl.BlockSpec((tm, 1), lambda m, k: (m, 0)),                  # 1/deg (f32)
        pl.BlockSpec((c, c), lambda m, k: (0, 0)),                   # W_root (bf16)
        pl.BlockSpec((c, c), lambda m, k: (0, 0)),                   # W_rel  (bf16)
        pl.BlockSpec((1, c), lambda m, k: (0, 0)),                   # bias   (f32)
    ]
    args = [A, x, x, inv_deg, w_root, w_rel, b_pad]

    if dropout_rate > 0.0:
        kernel = functools.partial(_rgcn_dropout_kernel, tk=tk, resident_x=resident,
                                   dropout_rate=float(dropout_rate))
        in_specs.append(pl.BlockSpec((1, 1), lambda m, k: (0, 0)))   # seed (i32)
        args.append(seed)
    else:
        kernel = functools.partial(_rgcn_kernel, tk=tk, resident_x=resident)

    return pl.pallas_call(
        kernel,
        out_shape=jax.ShapeDtypeStruct((n, c), jnp.bfloat16),        # bf16 activations
        grid=grid,
        in_specs=in_specs,
        out_specs=pl.BlockSpec((tm, c), lambda m, k: (m, 0)),
        scratch_shapes=[pltpu.VMEM((tm, c), jnp.float32),            # A@X accumulator
                        pltpu.VMEM((tm, c), jnp.float32)],           # root term
        compiler_params=pltpu.CompilerParams(
            dimension_semantics=("parallel", "arbitrary"),
            vmem_limit_bytes=VMEM_LIMIT,
        ),
        cost_estimate=pl.CostEstimate(
            flops=2 * n * n * c + 4 * n * c * c,
            transcendentals=0,
            bytes_accessed=2 * n * n + 6 * n * c + 8 * c * c,
        ),
    )(*args)


# ---------------------------------------------------------------------------
# Glue (plain JAX): adjacency build, weight padding, attention epilogue.
# ---------------------------------------------------------------------------
def build_adjacency(edge_index, n_pad):
    """Raw bf16 edge counts (exact small ints) + f32 1/deg; normalization done in-kernel."""
    src, dst = edge_index[0], edge_index[1]
    counts = jnp.zeros((n_pad, n_pad), jnp.float32).at[dst, src].add(1.0)
    deg = jnp.zeros((n_pad,), jnp.float32).at[dst].add(1.0)
    inv_deg = (1.0 / jnp.maximum(deg, 1.0)).reshape(n_pad, 1)
    return counts.astype(jnp.bfloat16), inv_deg


def _pad_weight(w, c_pad):
    c_in, c_out = w.shape
    return jnp.zeros((c_pad, c_pad), jnp.float32).at[:c_in, :c_out].set(w).astype(jnp.bfloat16)


def han_layer_forward(gs, E, metapath_emb, params, *, nreg, sub_layer,
                      dropout_p=0.0, ifdropout=False, key=None,
                      block_m=1024, block_k=2048, x_resident_bytes=8 << 20):
    in_size = E.shape[1]
    out_size = params["wq"].shape[1]
    c_pad = _round_up(max(in_size, out_size), C_LANE)

    finals = []
    for i, (edge_index, eids) in enumerate(gs):
        x = E[eids]                                            # node gather (glue)
        n = x.shape[0]
        n_pad = _round_up(n, 128)                              # aligned, lane-dense tiles
        A, inv_deg = build_adjacency(edge_index, n_pad)
        x = jnp.pad(x, ((0, n_pad - n), (0, c_pad - in_size))).astype(jnp.bfloat16)
        for j in range(sub_layer):
            w_root, w_rel, b = params["gnn"][sub_layer * i + j]
            wr = _pad_weight(w_root, c_pad)
            wl = _pad_weight(w_rel, c_pad)
            b_pad = jnp.zeros((1, c_pad), jnp.float32).at[:, :b.shape[1]].set(b)
            seed, rate = None, 0.0
            if ifdropout and dropout_p > 0.0:
                key, sub = jax.random.split(key)
                seed = jax.random.randint(sub, (1, 1), 0, jnp.iinfo(jnp.int32).max,
                                          dtype=jnp.int32)
                rate = float(dropout_p)
            x = rgcn_relu(A, x, inv_deg, wr, wl, b_pad, dropout_rate=rate, seed=seed,
                          block_m=block_m, block_k=block_k,
                          x_resident_bytes=x_resident_bytes)
        finals.append(x[:nreg, :out_size].astype(jnp.float32))

    # Semantic attention over (nreg x D) = (8 x 32): left to XLA (a dedicated
    # pallas_call's launch + DMA fixed cost dwarfs this compute).
    emb = jnp.stack(finals, axis=0)                            # (P, nreg, D)
    query = metapath_emb @ params["wq"] + params["bq"][0]      # (P, D)
    d = emb.shape[-1]
    scores = jnp.einsum("pnd,pd->np", emb, query) / jnp.sqrt(jnp.float32(d))
    attn = jax.nn.softmax(scores, axis=1)                      # softmax over metapaths
    return jnp.einsum("np,pnd->nd", attn, emb)                 # (nreg, D)


# ---------------------------------------------------------------------------
# Pure-JAX reference (mirrors the torch forward).  bf16=True mirrors the kernel's
# matmul-operand precision and bf16 activation storage for a tight check.
# ---------------------------------------------------------------------------
def han_layer_reference(gs, E, metapath_emb, params, *, nreg, sub_layer, bf16=False):
    def mp(v):
        return v.astype(jnp.bfloat16) if bf16 else v

    sems = []
    for i, (edge_index, eids) in enumerate(gs):
        x = E[eids]
        n = x.shape[0]
        src, dst = edge_index[0], edge_index[1]
        counts = jnp.zeros((n, n), jnp.float32).at[dst, src].add(1.0)
        deg = jnp.maximum(counts.sum(axis=1, keepdims=True), 1.0)
        for j in range(sub_layer):
            w_root, w_rel, b = params["gnn"][sub_layer * i + j]
            agg = jnp.dot(mp(counts), mp(x), preferred_element_type=jnp.float32) / deg
            out = (jnp.dot(mp(x), mp(w_root), preferred_element_type=jnp.float32)
                   + jnp.dot(mp(agg), mp(w_rel), preferred_element_type=jnp.float32)
                   + b)
            x = jnp.maximum(out, 0.0)
            if bf16:
                x = x.astype(jnp.bfloat16).astype(jnp.float32)   # bf16 activation storage
        sems.append(x[:nreg])
    emb = jnp.stack(sems, axis=1)                              # (nreg, P, D) torch layout
    query = metapath_emb @ params["wq"] + params["bq"][0]      # (P, D)
    d = emb.shape[-1]
    scores = jnp.einsum("npd,pd->np", emb, query) / jnp.sqrt(jnp.float32(d))
    attn = jax.nn.softmax(scores, axis=1)
    return jnp.einsum("np,npd->nd", attn, emb)


# ---------------------------------------------------------------------------
# Main
# ---------------------------------------------------------------------------
if __name__ == "__main__":
    num_meta_paths = 2
    sub_layer = 2
    in_size = 16
    out_size = 32
    nreg = 8
    d_metapath_emb = 24
    dropout_p = 0.1
    nrs = [3, 3]               # per-metapath relation counts (see TODO(synk) above)

    num_total_nodes = 300
    nodes_per_graph = 200      # non-multiple of 128 -> exercises N padding (-> 256)
    edges_per_graph = 1024

    key = jax.random.PRNGKey(0)
    k_E, k_me, k_q, k_graph, *k_w = jax.random.split(key, 4 + num_meta_paths * sub_layer)

    E = jax.random.normal(k_E, (num_total_nodes, in_size), jnp.float32)
    metapath_emb = jax.random.normal(k_me, (num_meta_paths, d_metapath_emb), jnp.float32)

    gnn_params = []
    for i in range(num_meta_paths):
        for j in range(sub_layer):
            c_in = in_size
            c_out = in_size if j < sub_layer - 1 else out_size
            kk = jax.random.split(k_w[i * sub_layer + j], 3)
            scale = math.sqrt(2.0 / (c_in + c_out))
            w_root = scale * jax.random.normal(kk[0], (c_in, c_out), jnp.float32)
            w_rel = scale * jax.random.normal(kk[1], (c_in, c_out), jnp.float32)
            b = 0.01 * jax.random.normal(kk[2], (1, c_out), jnp.float32)
            gnn_params.append((w_root, w_rel, b))
    kq1, kq2 = jax.random.split(k_q)
    wq = math.sqrt(2.0 / (d_metapath_emb + out_size)) * jax.random.normal(
        kq1, (d_metapath_emb, out_size), jnp.float32)
    bq = 0.01 * jax.random.normal(kq2, (1, out_size), jnp.float32)
    params = {"gnn": gnn_params, "wq": wq, "bq": bq}

    # Synthetic graphs: gs[i] = (edge_index, eids).
    gs = []
    for i in range(num_meta_paths):
        kg1, kg2, k_graph = jax.random.split(jax.random.fold_in(k_graph, i), 3)
        edge_index = jax.random.randint(kg1, (2, edges_per_graph), 0, nodes_per_graph)
        eids = jax.random.permutation(kg2, num_total_nodes)[:nodes_per_graph]
        gs.append((edge_index, eids))

    # Small tiles so the demo exercises a real (2, 2) grid: row-parallel tiles
    # (even m-grid for v7x) AND k-accumulation with pl.when init/finalize.
    out = han_layer_forward(gs, E, metapath_emb, params, nreg=nreg, sub_layer=sub_layer,
                            ifdropout=False, block_m=128, block_k=128)
    out = jax.block_until_ready(out)
    assert out.shape == (nreg, out_size), out.shape

    # Tight check against a reference with the same bf16 operand/storage precision.
    ref_match = han_layer_reference(gs, E, metapath_emb, params, nreg=nreg,
                                    sub_layer=sub_layer, bf16=True)
    assert jnp.allclose(out, ref_match, rtol=1e-2, atol=1e-2), \
        float(jnp.max(jnp.abs(out - ref_match)))

    # Loose sanity check against the pure-f32 reference (bf16 matmuls -> relaxed tol).
    ref_f32 = han_layer_reference(gs, E, metapath_emb, params, nreg=nreg,
                                  sub_layer=sub_layer, bf16=False)
    assert jnp.allclose(out, ref_f32, rtol=1e-1, atol=1e-1), \
        float(jnp.max(jnp.abs(out - ref_f32)))

    # Exercise the streamed-X fallback path (X too big for residency budget).
    out_stream = han_layer_forward(gs, E, metapath_emb, params, nreg=nreg,
                                   sub_layer=sub_layer, ifdropout=False,
                                   block_m=128, block_k=128, x_resident_bytes=0)
    out_stream = jax.block_until_ready(out_stream)
    assert jnp.allclose(out, out_stream, rtol=1e-5, atol=1e-5)

    # Exercise the in-kernel hash-RNG dropout path (no HBM mask stream).
    out_do = han_layer_forward(gs, E, metapath_emb, params, nreg=nreg, sub_layer=sub_layer,
                               ifdropout=True, dropout_p=dropout_p,
                               key=jax.random.PRNGKey(1), block_m=128, block_k=128)
    out_do = jax.block_until_ready(out_do)
    assert out_do.shape == (nreg, out_size)
    assert bool(jnp.all(jnp.isfinite(out_do)))

    print("KERNEL_OK")
</pallas_src>

<mosaic_0001>
module attributes {stable_mosaic.version = 11 : i64} {
  func.func @_rgcn_kernel(%arg0: i32, %arg1: i32, %arg2: memref<128x128xbf16, #tpu.memory_space<vmem>>, %arg3: memref<256x128xbf16, #tpu.memory_space<vmem>>, %arg4: memref<128x128xbf16, #tpu.memory_space<vmem>>, %arg5: memref<128x1xf32, #tpu.memory_space<vmem>>, %arg6: memref<128x128xbf16, #tpu.memory_space<vmem>>, %arg7: memref<128x128xbf16, #tpu.memory_space<vmem>>, %arg8: memref<1x128xf32, #tpu.memory_space<vmem>>, %arg9: memref<128x128xbf16, #tpu.memory_space<vmem>>, %arg10: memref<128x128xf32, #tpu.memory_space<vmem>>, %arg11: memref<128x128xf32, #tpu.memory_space<vmem>>) attributes {dimension_semantics = [#tpu.dimension_semantics<parallel>, #tpu.dimension_semantics<arbitrary>], iteration_bounds = array<i64: 2, 2>, scalar_prefetch = 0 : i64, scratch_operands = 2 : i64, tpu.core_type = #tpu.core_type<tc>, window_params = [{transform_indices = @transform_0, window_bounds = array<i64: 128, 128>}, {pipeline_mode = #tpu.pipeline_mode<synchronous>, transform_indices = @transform_1, window_bounds = array<i64: 256, 128>}, {transform_indices = @transform_2, window_bounds = array<i64: 128, 128>}, {transform_indices = @transform_3, window_bounds = array<i64: 128, 1>}, {pipeline_mode = #tpu.pipeline_mode<synchronous>, transform_indices = @transform_4, window_bounds = array<i64: 128, 128>}, {pipeline_mode = #tpu.pipeline_mode<synchronous>, transform_indices = @transform_5, window_bounds = array<i64: 128, 128>}, {pipeline_mode = #tpu.pipeline_mode<synchronous>, transform_indices = @transform_6, window_bounds = array<i64: 1, 128>}, {transform_indices = @transform_7, window_bounds = array<i64: 128, 128>}]} {
    %c0_i32 = arith.constant 0 : i32
    %0 = arith.cmpi eq, %arg1, %c0_i32 : i32
    %1 = arith.extui %0 : i1 to i32
    %c0_i32_0 = arith.constant 0 : i32
    %2 = arith.cmpi ne, %1, %c0_i32_0 : i32
    scf.if %2 {
      %cst_8 = arith.constant 0.000000e+00 : f32
      %14 = vector.broadcast %cst_8 : f32 to vector<128x128xf32>
      %c0_9 = arith.constant 0 : index
      %c0_10 = arith.constant 0 : index
      %15 = vector.load %arg10[%c0_9, %c0_10] : memref<128x128xf32, #tpu.memory_space<vmem>>, vector<128x128xf32>
      tpu.vector_store %arg10[%c0_9, %c0_10], %14 {strides = array<i32>} : memref<128x128xf32, #tpu.memory_space<vmem>>, vector<128x128xf32>,
      %c0_11 = arith.constant 0 : index
      %c0_12 = arith.constant 0 : index
      %16 = vector.load %arg4[%c0_11, %c0_12] : memref<128x128xbf16, #tpu.memory_space<vmem>>, vector<128x128xbf16>
      %c0_13 = arith.constant 0 : index
      %c0_14 = arith.constant 0 : index
      %17 = vector.load %arg6[%c0_13, %c0_14] : memref<128x128xbf16, #tpu.memory_space<vmem>>, vector<128x128xbf16>
      %cst_15 = arith.constant dense<0.000000e+00> : vector<128x128xf32>
      %18 = tpu.matmul %16, %17, %cst_15 {dimension_numbers = #tpu.dot_dimension_numbers<[1], [0], [0], [1], [0, 0, 1, 1], [], []>} : vector<128x128xbf16>, vector<128x128xbf16>, vector<128x128xf32> -> vector<128x128xf32>
      %c0_16 = arith.constant 0 : index
      %c0_17 = arith.constant 0 : index
      %19 = vector.load %arg11[%c0_16, %c0_17] : memref<128x128xf32, #tpu.memory_space<vmem>>, vector<128x128xf32>
      tpu.vector_store %arg11[%c0_16, %c0_17], %18 {strides = array<i32>} : memref<128x128xf32, #tpu.memory_space<vmem>>, vector<128x128xf32>,
    } else {
    }
    %c128_i32 = arith.constant 128 : i32
    %3 = arith.muli %arg1, %c128_i32 : i32
    %4 = arith.index_cast %3 : i32 to index
    %c0 = arith.constant 0 : index
    %5 = vector.load %arg3[%4, %c0] : memref<256x128xbf16, #tpu.memory_space<vmem>>, vector<128x128xbf16>
    %c0_1 = arith.constant 0 : index
    %c0_2 = arith.constant 0 : index
    %6 = vector.load %arg10[%c0_1, %c0_2] : memref<128x128xf32, #tpu.memory_space<vmem>>, vector<128x128xf32>
    %c0_3 = arith.constant 0 : index
    %c0_4 = arith.constant 0 : index
    %7 = vector.load %arg2[%c0_3, %c0_4] : memref<128x128xbf16, #tpu.memory_space<vmem>>, vector<128x128xbf16>
    %cst = arith.constant dense<0.000000e+00> : vector<128x128xf32>
    %8 = tpu.matmul %7, %5, %cst {dimension_numbers = #tpu.dot_dimension_numbers<[1], [0], [0], [1], [0, 0, 1, 1], [], []>} : vector<128x128xbf16>, vector<128x128xbf16>, vector<128x128xf32> -> vector<128x128xf32>
    %9 = arith.addf %6, %8 : vector<128x128xf32>
    %c0_5 = arith.constant 0 : index
    %c0_6 = arith.constant 0 : index
    %10 = vector.load %arg10[%c0_5, %c0_6] : memref<128x128xf32, #tpu.memory_space<vmem>>, vector<128x128xf32>
    tpu.vector_store %arg10[%c0_5, %c0_6], %9 {strides = array<i32>} : memref<128x128xf32, #tpu.memory_space<vmem>>, vector<128x128xf32>,
    %c1_i32 = arith.constant 1 : i32
    %11 = arith.cmpi eq, %arg1, %c1_i32 : i32
    %12 = arith.extui %11 : i1 to i32
    %c0_i32_7 = arith.constant 0 : i32
    %13 = arith.cmpi ne, %12, %c0_i32_7 : i32
    scf.if %13 {
      %c0_8 = arith.constant 0 : index
      %c0_9 = arith.constant 0 : index
      %14 = vector.load %arg10[%c0_8, %c0_9] : memref<128x128xf32, #tpu.memory_space<vmem>>, vector<128x128xf32>
      %c0_10 = arith.constant 0 : index
      %c0_11 = arith.constant 0 : index
      %15 = vector.load %arg5[%c0_10, %c0_11] : memref<128x1xf32, #tpu.memory_space<vmem>>, vector<128x1xf32>
      %16 = vector.broadcast %15 : vector<128x1xf32> to vector<128x128xf32>
      %17 = arith.mulf %14, %16 : vector<128x128xf32>
      %18 = arith.truncf %17 : vector<128x128xf32> to vector<128x128xbf16>
      %c0_12 = arith.constant 0 : index
      %c0_13 = arith.constant 0 : index
      %19 = vector.load %arg7[%c0_12, %c0_13] : memref<128x128xbf16, #tpu.memory_space<vmem>>, vector<128x128xbf16>
      %cst_14 = arith.constant dense<0.000000e+00> : vector<128x128xf32>
      %20 = tpu.matmul %18, %19, %cst_14 {dimension_numbers = #tpu.dot_dimension_numbers<[1], [0], [0], [1], [0, 0, 1, 1], [], []>} : vector<128x128xbf16>, vector<128x128xbf16>, vector<128x128xf32> -> vector<128x128xf32>
      %c0_15 = arith.constant 0 : index
      %c0_16 = arith.constant 0 : index
      %21 = vector.load %arg11[%c0_15, %c0_16] : memref<128x128xf32, #tpu.memory_space<vmem>>, vector<128x128xf32>
      %22 = arith.addf %20, %21 : vector<128x128xf32>
      %c0_17 = arith.constant 0 : index
      %c0_18 = arith.constant 0 : index
      %23 = vector.load %arg8[%c0_17, %c0_18] : memref<1x128xf32, #tpu.memory_space<vmem>>, vector<1x128xf32>
      %24 = vector.broadcast %23 : vector<1x128xf32> to vector<128x128xf32>
      %25 = arith.addf %22, %24 : vector<128x128xf32>
      %cst_19 = arith.constant 0.000000e+00 : f32
      %26 = vector.broadcast %cst_19 : f32 to vector<128x128xf32>
      %27 = arith.maximumf %25, %26 : vector<128x128xf32>
      %28 = arith.truncf %27 : vector<128x128xf32> to vector<128x128xbf16>
      %c0_20 = arith.constant 0 : index
      %c0_21 = arith.constant 0 : index
      %29 = vector.load %arg9[%c0_20, %c0_21] : memref<128x128xbf16, #tpu.memory_space<vmem>>, vector<128x128xbf16>
      tpu.vector_store %arg9[%c0_20, %c0_21], %28 {strides = array<i32>} : memref<128x128xbf16, #tpu.memory_space<vmem>>, vector<128x128xbf16>,
    } else {
    }
    return
  }
  func.func @transform_0(%arg0: i32, %arg1: i32) -> (i32, i32) {
    %c0_i32 = arith.constant 0 : i32
    return %arg0, %arg1 : i32, i32
  }
  func.func @transform_1(%arg0: i32, %arg1: i32) -> (i32, i32) {
    %c0_i32 = arith.constant 0 : i32
    %c0_i32_0 = arith.constant 0 : i32
    %c0_i32_1 = arith.constant 0 : i32
    return %c0_i32, %c0_i32_0 : i32, i32
  }
  func.func @transform_2(%arg0: i32, %arg1: i32) -> (i32, i32) {
    %c0_i32 = arith.constant 0 : i32
    %c0_i32_0 = arith.constant 0 : i32
    return %arg0, %c0_i32 : i32, i32
  }
  func.func @transform_3(%arg0: i32, %arg1: i32) -> (i32, i32) {
    %c0_i32 = arith.constant 0 : i32
    %c0_i32_0 = arith.constant 0 : i32
    return %arg0, %c0_i32 : i32, i32
  }
  func.func @transform_4(%arg0: i32, %arg1: i32) -> (i32, i32) {
    %c0_i32 = arith.constant 0 : i32
    %c0_i32_0 = arith.constant 0 : i32
    %c0_i32_1 = arith.constant 0 : i32
    return %c0_i32, %c0_i32_0 : i32, i32
  }
  func.func @transform_5(%arg0: i32, %arg1: i32) -> (i32, i32) {
    %c0_i32 = arith.constant 0 : i32
    %c0_i32_0 = arith.constant 0 : i32
    %c0_i32_1 = arith.constant 0 : i32
    return %c0_i32, %c0_i32_0 : i32, i32
  }
  func.func @transform_6(%arg0: i32, %arg1: i32) -> (i32, i32) {
    %c0_i32 = arith.constant 0 : i32
    %c0_i32_0 = arith.constant 0 : i32
    %c0_i32_1 = arith.constant 0 : i32
    return %c0_i32, %c0_i32_0 : i32, i32
  }
  func.func @transform_7(%arg0: i32, %arg1: i32) -> (i32, i32) {
    %c0_i32 = arith.constant 0 : i32
    %c0_i32_0 = arith.constant 0 : i32
    return %arg0, %c0_i32 : i32, i32
  }
}

</mosaic_0001>

<bundles_post_ra>
// kernel: tpu_custom_call.1
= control target key start
LH: loop header
LB: loop body
LE: loop exit
PB: predicated region body
PF: predicated region fallthrough
CT: control target
= control target key end

     0   :  { %s2582_s0 = inlined_call_operand.vmem [shape: bf16[256,256], index: 0, kind: input, shape index: {}]   ;;  %s2583_s1 = inlined_call_operand.hbm [shape: bf16[256,128], index: 1, kind: input, shape index: {}]   ;;  %s2584_s2 = inlined_call_operand.hbm [shape: bf16[256,128], index: 2, kind: input, shape index: {}]   ;;  %s2585_s3 = inlined_call_operand.vmem [shape: f32[256,1], index: 3, kind: input, shape index: {}]   ;;  %s2586_s4 = inlined_call_operand.hbm [shape: bf16[128,128], index: 4, kind: input, shape index: {}]   ;;  %s2587_s5 = inlined_call_operand.hbm [shape: bf16[128,128], index: 5, kind: input, shape index: {}]   ;;  %s2588_s6 = inlined_call_operand.vmem [shape: f32[1,128], index: 6, kind: input, shape index: {}]   ;;  %s2589_s7 = inlined_call_operand.hbm [shape: bf16[256,128], index: 7, kind: output, shape index: {}]  }
   0x1   :  { %2599 = sst [smem:[#allocation27_spill]] %s2583_s1 }
   0x2   :  { %2600 = sst [smem:[#allocation28_spill]] %s2588_s6 }
   0x3   :  { %2601 = sst [smem:[#allocation29_spill]] %s2589_s7 }
   0x4   :  { %12 = vsyncpa [#allocation6], 0 }
   0x5   :  { %13 = vsyncpa [#allocation9], 0 }
   0x6   :  { %15 = vsyncpa [#allocation9 + $0x1], 0 }
   0x7   :  { %16 = vsyncpa [#allocation12], 0 }
   0x8   :  { %17 = vsyncpa [#allocation7], 0 }
   0x9   :  { %19 = vsyncpa [#allocation7 + $0x1], 0  ;;  %s2242_s24 = smov 0   ;;  %s2244_s25 = smov 0  }
   0xa   :  { %s2246_s26 = smov 0   ;;  %s2248_s27 = smov 0  }
   0xb   :  { %s2250_s28 = smov 0   ;;  %s2252_s29 = smov 0  }
   0xc   :  { %s2254_s30 = smov 0   ;;  %s2256_s8 = smov 0  }
   0xd   :  { %s2258_s9 = smov 0   ;;  %s2260_s10 = smov 0  }
   0xe LB: > { %2602 = sst [smem:[#allocation19_spill]] %s2153_s24  ;;  %s2293_s11 = sadd.s32 4294967295, %s2189_s10   ;;  %s2189_s10 = sphi %s2260_s10, %s25_s10   ;;  %s2185_s9 = sphi %s2258_s9, %s2644_s9   ;;  %s2181_s8 = sphi %s2256_s8, %s2643_s8   ;;  %s2177_s30 = sphi %s2254_s30, %s2642_s30   ;;  %s2173_s29 = sphi %s2252_s29, %s2641_s29   ;;  %s2169_s28 = sphi %s2250_s28, %s2640_s28   ;;  %s2165_s27 = sphi %s2248_s27, %s2639_s27   ;;  %s2161_s26 = sphi %s2246_s26, %s2638_s26   ;;  %s2157_s25 = sphi %s2244_s25, %s2637_s25   ;;  %s2153_s24 = sphi %s2242_s24, %s2636_s24  }
   0xf   : > { %2603 = sst [smem:[#allocation20_spill]] %s2173_s29  ;;  %s1460_s12 = sadd.s32 4294967294, %s2189_s10  }
  0x10   : > { %s34_s13 = sadd.s32 1, %s2181_s8  ;;  %s37_s14 = sadd.s32 1, %s2185_s9 }
  0x11   : > { %p35_p0 = scmp.ge.s32.totalorder %s34_s13, 2  ;;  %s46_s15 = sadd.s32 1, %s2169_s28 }
  0x12   : > { %p53_p1 = scmp.ne.s32.totalorder %s2169_s28, %s2165_s27  ;;  %p54_p2 = scmp.eq.s32.totalorder %s2189_s10, 0 }
  0x13   : > { %s2646_s13 = smov (%p35_p0, %s34_s13), 0  ;;  %s2648_s14 = smov (!%p35_p0, %s37_s14), %s2185_s9 }
  0x14   : > { %2604 = sst [smem:[#allocation21_spill]] %s2646_s13  ;;  %s42_s16 = ssub.s32 %s2181_s8, %s2646_s13 }
  0x15   : > { %p2307_p3 = por %p54_p2, %p53_p1  ;;  %p39_p4 = scmp.ge.s32.totalorder %s2648_s14, 2 }
  0x16   : > { %s93_s18 = sadd.s32 1, %s2161_s26  ;;  %p100_p5 = scmp.ne.s32.totalorder %s2161_s26, %s2157_s25 }
  0x17   : > { %p106_p6 = scmp.ne.s32.totalorder %s2157_s25, %s2153_s24  ;;  %s2650_s14 = smov (%p39_p4, %s2648_s14), 0 }
  0x18   : > { %2606 = sst [smem:[#allocation22_spill]] %s2650_s14  ;;  %p2321_p7 = por %p100_p5, %p54_p2 }
  0x19   : > { %p2592_p8 = scmp.eq.s32.totalorder %s2293_s11, 0  ;;  %s41_s20 = ssub.s32 %s2185_s9, %s2650_s14 }
  0x1a   : > { %p219_p9 = scmp.eq.s32.totalorder %s2293_s11, 3  ;;  %s43_s21 = sor.u32 %s42_s16, %s41_s20 }
  0x1b   : > { %p91_p10 = scmp.eq.s32.totalorder %s41_s20, 0  ;;  %p44_p11 = scmp.eq.s32.totalorder %s43_s21, 0 }
  0x1c   : > { %p2334_p12 = por %p2592_p8, %p106_p6  ;;  %p2347_p13 = por %p219_p9, %p100_p5 }
  0x1d   : > { %s2339_s23 = scalar_select %p91_p10, %s2161_s26, %s93_s18  }
  0x1e   : > { %s2342_s13 = scalar_select %p44_p11, %s2169_s28, %s46_s15  }
  0x1f   : > { %2609 = sst [smem:[#allocation23_spill]] %s2339_s23  ;;  %p225_p0 = scmp.eq.s32.totalorder %s1460_s12, 3 }
  0x20   : > { %2610 = sst [smem:[#allocation24_spill]] %s2342_s13  ;;  %p1461_p1 = scmp.ge.s32.totalorder %s2189_s10, 1 }
  0x21   : > { %s2611_s7 = scalar_select %p2347_p13, 1, 0 }
  0x22   : > { %p232_p2 = scmp.lt.s32.totalorder %s2189_s10, 5  ;;  %p2356_p4 = por %p225_p0, %p106_p6 }
  0x23   : > { %2612 = sst [smem:[#allocation25_spill]] %s2611_s7  ;;  %s2191_s12 = smov [#allocation5]  }
  0x24   : > { %s2613_s16 = scalar_select %p2356_p4, 1, 0 }
  0x25   : > { %p2360_p8 = pnand %p1461_p1, %p232_p2  ;;  %s2616_s1 = sld [smem:[#allocation27_spill]] }
  0x26   : > { %2614 = sst [smem:[#allocation26_spill]] %s2613_s16  ;;  %s245_s14 = sshll.u32 %s2191_s12, 4  ;;  %s246_s14 = int_to_ptr.vmem [resolvable:$true] %s245_s14 }
  0x27   : > { %p1829_p5 = pneg %p2360_p8  ;;  %p2617_p9 = scmp.eq.s32.totalorder %s2293_s11, 0 }
  0x28   : > { %s257_s18 = sshll.u32 %s2586_s4, 4  ;;  %s2192_s15 = smov 64   ;;  %s258_s18 = int_to_ptr.hbm [resolvable:$true] %s257_s18 }
  0x29   : > { %p2371_p6 = pnand %p1829_p5, %p2617_p9  ;;  %s2194_s24 = smov [#allocation10]  }
  0x2a   : > { %s259_s12 = sshll.u32 %s2194_s24, 4  ;;  %s271_s29 = sshll.u32 %s2587_s5, 4  ;;  %s260_s12 = int_to_ptr.vmem [resolvable:$true] %s259_s12  ;;  %s272_s29 = int_to_ptr.hbm [resolvable:$true] %s271_s29 }
  0x2b   : > { %s243_s21 = sshll.u32 %s2616_s1, 4  ;;  %s2193_s1 = smov 4   ;;  %s244_s21 = int_to_ptr.hbm [resolvable:$true] %s243_s21 }
  0x2c   : > { %1832 = dma.hbm_to_vmem [thread:$0]  (!%p2371_p6), %s244_s21, 2048, %s246_s14, [#allocation6], %s2192_s15, %s2192_s15, %s2193_s1  }
  0x2d   : > { %1835 = dma.hbm_to_vmem [thread:$0]  (!%p2371_p6), %s258_s18, 1024, %s260_s12, [#allocation9], %s2192_s15, %s2192_s15, %s2193_s1  }
  0x2e   : > { %s2195_s23 = smov [#allocation11]   ;;  %p1465_p10 = scmp.ge.s32.totalorder %s2189_s10, 4 }
  0x2f   : > { %s273_s16 = sshll.u32 %s2195_s23, 4  ;;  %s274_s16 = int_to_ptr.vmem [resolvable:$true] %s273_s16 }
  0x30   : > { %1838 = dma.hbm_to_vmem [thread:$0]  (!%p2371_p6), %s272_s29, 1024, %s274_s16, [#allocation12], %s2192_s15, %s2192_s15, %s2193_s1  }
  0x31   : > { %286 = sbr.rel (%p1465_p10) target bundleno = 83 (0x53), region = 32 }
  0x36   : > { %289 = sbr.rel (!%p2307_p3) target bundleno = 76 (0x4c), region = 36  ;;  %s291_s6 = sand.u32 (%p2307_p3), 1, %s2169_s28  }
  0x37   : > { %s1651_s7 = sshll.u32 (%p2307_p3), %s2185_s9, 5  ;;  %s1466_s24 = sshll.u32 (%p2307_p3), %s291_s6, 6 }
  0x38   : > { %s296_s14 = sadd.s32 (%p2307_p3), %s2181_s8, %s1651_s7  ;;  %s293_s1 = scalar_lea.vmem (%p2307_p3), [#allocation4], %s1466_s24 }
  0x39   : > { %s1469_s21 = sshll.u32 (%p2307_p3), %s296_s14, 2 }
  0x3a   : > { %s2396_s23 = scalar_lea.vmem (%p2307_p3), %s2582_s0, %s1469_s21 }
  0x3b   : > { %v315_v0 = vld [vmem:[%s2396_s23] sm:$0xf]  ;;  %v317_v1 = vld [vmem:[%s2396_s23 + $0x8] sm:$0xf]  ;;  %v319_v2 = vld [vmem:[%s2396_s23 + $0x10] sm:$0xf] }
  0x3c   : > { %316 = vst [vmem:[%s293_s1] sm:$0xf] %v315_v0  ;;  %v321_v3 = vld [vmem:[%s2396_s23 + $0x18] sm:$0xf]  ;;  %v323_v4 = vld [vmem:[%s2396_s23 + $0x20] sm:$0xf] }
  0x3d   : > { %318 = vst [vmem:[%s293_s1 + $0x4] sm:$0xf] %v317_v1  ;;  %v325_v5 = vld [vmem:[%s2396_s23 + $0x28] sm:$0xf]  ;;  %v327_v6 = vld [vmem:[%s2396_s23 + $0x30] sm:$0xf] }
  0x3e   : > { %320 = vst [vmem:[%s293_s1 + $0x8] sm:$0xf] %v319_v2  ;;  %v329_v7 = vld [vmem:[%s2396_s23 + $0x38] sm:$0xf]  ;;  %v331_v8 = vld [vmem:[%s2396_s23 + $0x40] sm:$0xf] }
  0x3f   : > { %322 = vst [vmem:[%s293_s1 + $0xc] sm:$0xf] %v321_v3  ;;  %v333_v9 = vld [vmem:[%s2396_s23 + $0x48] sm:$0xf]  ;;  %v335_v10 = vld [vmem:[%s2396_s23 + $0x50] sm:$0xf] }
  0x40   : > { %324 = vst [vmem:[%s293_s1 + $0x10] sm:$0xf] %v323_v4  ;;  %v337_v11 = vld [vmem:[%s2396_s23 + $0x58] sm:$0xf]  ;;  %v339_v12 = vld [vmem:[%s2396_s23 + $0x60] sm:$0xf] }
  0x41   : > { %326 = vst [vmem:[%s293_s1 + $0x14] sm:$0xf] %v325_v5  ;;  %v341_v13 = vld [vmem:[%s2396_s23 + $0x68] sm:$0xf]  ;;  %v343_v14 = vld [vmem:[%s2396_s23 + $0x70] sm:$0xf] }
  0x42   : > { %328 = vst [vmem:[%s293_s1 + $0x18] sm:$0xf] %v327_v6  ;;  %v345_v15 = vld [vmem:[%s2396_s23 + $0x78] sm:$0xf] }
  0x43   : > { %330 = vst [vmem:[%s293_s1 + $0x1c] sm:$0xf] %v329_v7 }
  0x44   : > { %332 = vst [vmem:[%s293_s1 + $0x20] sm:$0xf] %v331_v8 }
  0x45   : > { %334 = vst [vmem:[%s293_s1 + $0x24] sm:$0xf] %v333_v9 }
  0x46   : > { %336 = vst [vmem:[%s293_s1 + $0x28] sm:$0xf] %v335_v10 }
  0x47   : > { %338 = vst [vmem:[%s293_s1 + $0x2c] sm:$0xf] %v337_v11 }
  0x48   : > { %340 = vst [vmem:[%s293_s1 + $0x30] sm:$0xf] %v339_v12 }
  0x49   : > { %342 = vst [vmem:[%s293_s1 + $0x34] sm:$0xf] %v341_v13 }
  0x4a   : > { %344 = vst [vmem:[%s293_s1 + $0x38] sm:$0xf] %v343_v14 }
  0x4b   : > { %346 = vst [vmem:[%s293_s1 + $0x3c] sm:$0xf] %v345_v15 }
  0x4c PF: > { %s403_s29 = sand.u32 1, %s2189_s10   ;;  %s405_s13 = sand.u32 1, %s2161_s26  }
  0x4d   : > { %s1470_s17 = sshll.u32 %s405_s13, 6  ;;  %s1652_s15 = sshll.u32 %s2185_s9, 6 }
  0x4e   : > { %s412_s7 = scalar_lea.hbm %s2584_s2, %s1652_s15  ;;  %s407_s24 = scalar_lea.vmem [#allocation8], %s1470_s17 }
  0x4f   : > { %s415_s14 = sshll.u32 %s407_s24, 4  ;;  %s413_s21 = sshll.u32 %s412_s7, 4  ;;  %s416_s14 = int_to_ptr.vmem [resolvable:$true] %s415_s14  ;;  %s414_s21 = int_to_ptr.hbm [resolvable:$true] %s413_s21 }
  0x50   : > { %s404_s18 = scalar_lea.sflag [#allocation9], %s403_s29  ;;  %s2196_s12 = smov 64  }
  0x51   : > { %s2197_s23 = smov 4  }
  0x52   : > { %1819 = dma.hbm_to_vmem [thread:$0]  (%p2321_p7), %s414_s21, 1024, %s416_s14, %s404_s18, %s2196_s12, %s2196_s12, %s2197_s23  }
  0x53 PF: > { %436 = sbr.rel (%p2360_p8) target bundleno = 833 (0x341), region = 85  ;;  %s439_s1 = sand.u32 (!%p2360_p8), 1, %s2165_s27  }
  0x54   : > { %s1474_s13 = sshll.u32 (!%p2360_p8), %s439_s1, 6  ;;  %p2619_p3 = scmp.eq.s32.totalorder (!%p2360_p8), %s2293_s11, 0 }
  0x55   : > { %s2425_s16 = scalar_lea.vmem (!%p2360_p8), [#allocation4], %s1474_s13 }
  0x58   : > { %2132 = dma.done.wait (%p2619_p3), [#allocation6], 2048   ;;  %p2620_p11 = pmov %p2619_p3 }
  0x59   : > { %s450_s19 = sand.u32 1, %s2293_s11   ;;  %s452_s29 = sand.u32 1, %s2157_s25  }
  0x5a   : > { %2134 = vsyncadd (%p2620_p11), [#allocation6], 4294965248  ;;  %s1476_s20 = sshll.u32 %s452_s29, 6  ;;  %s451_s17 = scalar_lea.sflag [#allocation9], %s450_s19 }
  0x5b   : > { %s2435_s15 = scalar_lea.vmem [#allocation8], %s1476_s20 }
  0x5c   : > { %2136 = dma.done.wait (%p2334_p12), %s451_s17, 1024  }
  0x5d   : > { %2138 = vsyncadd (%p2334_p12), %s451_s17, 4294966272  ;;  %p2621_p7 = pmov %p2619_p3 }
  0x5e   : > { %p2622_p8 = pmov %p2619_p3 }
  0x5f   : > { %2140 = dma.done.wait (%p2621_p7), [#allocation9], 1024  }
  0x60   : > { %2142 = vsyncadd (%p2622_p8), [#allocation9], 4294966272  ;;  %p2623_p0 = pmov %p2619_p3 }
  0x62   : > { %2144 = dma.done.wait (%p2623_p0), [#allocation12], 1024   ;;  %p2624_p1 = pmov %p2623_p0 }
  0x63   : > { %s1480_s27 = sshll.u32 %s2177_s30, 4  ;;  %s2455_s14 = scalar_lea.vmem [#allocation13], %s1476_s20 }
  0x64   : > { %2146 = vsyncadd (%p2624_p1), [#allocation12], 4294966272  ;;  %p508_p2 = scmp.lt.s32.totalorder %s1480_s27, 31  ;;  %s2625_s21 = sld [smem:[#allocation20_spill]] }
  0x66   : > { %s2652_s27 = smov (!%p508_p2, %s1480_s27), 31 }
  0x67   : > { %s1481_s6 = sshll.u32 %s2652_s27, 3 }
  0x68   : > { %s2453_s24 = scalar_lea.vmem %s2585_s3, %s1481_s6 }
  0x6a   : > { %p1482_p12 = scmp.ne.s32.totalorder %s2625_s21, 0 }
  0x6c   : > { %517 = sbr.rel (%p1482_p12) target bundleno = 304 (0x130), region = 109 }
  0x71   : > { %v1668_v16 = vld [vmem:[#allocation10 + $0x38] sm:$0xff]  ;;  %v2198_v17 = vmov 0.0   ;;  %v1667_v18 = vld [vmem:[#allocation10 + $0x30] sm:$0xff]  ;;  %v1666_v19 = vld [vmem:[#allocation10 + $0x28] sm:$0xff] }
  0x72   : > { %518 = vst [vmem:[#allocation2 + $0x30] sm:$0xff] %v2198_v17  ;;  %662 = vmatpush.bf16.msra.mxu0 %v1668_v16  ;;  %1741 = vmatpush.bf16.msra.mxu1 %v1668_v16  ;;  %v1665_v20 = vld [vmem:[#allocation10 + $0x20] sm:$0xff]  ;;  %v1664_v21 = vld [vmem:[#allocation10 + $0x18] sm:$0xff]  ;;  %v1663_v22 = vld [vmem:[#allocation10 + $0x10] sm:$0xff] }
  0x73   : > { %519 = vst [vmem:[#allocation2] sm:$0xff] %v2198_v17  ;;  %1742 = vmatpush.bf16.msra.mxu2 %v1668_v16  ;;  %1743 = vmatpush.bf16.msra.mxu3 %v1668_v16  ;;  %v1662_v23 = vld [vmem:[#allocation10 + $0x8] sm:$0xff]  ;;  %v1661_v24 = vld [vmem:[#allocation10] sm:$0xff]  ;;  %v1655_v26 = vld [vmem:[%s2435_s15 + $0x10] sm:$0xff] }
  0x74   : > { %520 = vst [vmem:[#allocation2 + $0x58] sm:$0xff] %v2198_v17  ;;  %v1653_v25 = vld [vmem:[%s2435_s15] sm:$0xff]  ;;  %v1659_v28 = vld [vmem:[%s2435_s15 + $0x30] sm:$0xff]  ;;  %v1654_v29 = vld [vmem:[%s2435_s15 + $0x8] sm:$0xff] }
  0x75   : > { %521 = vst [vmem:[#allocation2 + $0x18] sm:$0xff] %v2198_v17  ;;  %v1657_v27 = vld [vmem:[%s2435_s15 + $0x20] sm:$0xff]  ;;  %v1656_v30 = vld [vmem:[%s2435_s15 + $0x18] sm:$0xff]  ;;  %v1658_v31 = vld [vmem:[%s2435_s15 + $0x28] sm:$0xff] }
  0x76   : > { %522 = vst [vmem:[#allocation2 + $0x50] sm:$0xff] %v2198_v17  ;;  %663 = vmatpush.bf16.msra.mxu0 %v1667_v18  ;;  %1744 = vmatpush.bf16.msra.mxu1 %v1667_v18  ;;  %v1660_v32 = vld [vmem:[%s2435_s15 + $0x38] sm:$0xff] }
  0x77   : > { %523 = vst [vmem:[#allocation2 + $0x68] sm:$0xff] %v2198_v17  ;;  %1745 = vmatpush.bf16.msra.mxu2 %v1667_v18  ;;  %1746 = vmatpush.bf16.msra.mxu3 %v1667_v18 }
  0x78   : > { %524 = vst [vmem:[#allocation2 + $0x8] sm:$0xff] %v2198_v17 }
  0x79   : > { %525 = vst [vmem:[#allocation2 + $0x48] sm:$0xff] %v2198_v17 }
  0x7a   : > { %526 = vst [vmem:[#allocation2 + $0x40] sm:$0xff] %v2198_v17  ;;  %664 = vmatpush.bf16.msra.mxu0 %v1666_v19  ;;  %1747 = vmatpush.bf16.msra.mxu1 %v1666_v19 }
  0x7b   : > { %527 = vst [vmem:[#allocation2 + $0x20] sm:$0xff] %v2198_v17  ;;  %1748 = vmatpush.bf16.msra.mxu2 %v1666_v19  ;;  %1749 = vmatpush.bf16.msra.mxu3 %v1666_v19 }
  0x7c   : > { %528 = vst [vmem:[#allocation2 + $0x10] sm:$0xff] %v2198_v17 }
  0x7d   : > { %529 = vst [vmem:[#allocation2 + $0x38] sm:$0xff] %v2198_v17 }
  0x7e   : > { %530 = vst [vmem:[#allocation2 + $0x60] sm:$0xff] %v2198_v17  ;;  %665 = vmatpush.bf16.msra.mxu0 %v1665_v20  ;;  %1750 = vmatpush.bf16.msra.mxu1 %v1665_v20 }
  0x7f   : > { %531 = vst [vmem:[#allocation2 + $0x70] sm:$0xff] %v2198_v17  ;;  %1751 = vmatpush.bf16.msra.mxu2 %v1665_v20  ;;  %1752 = vmatpush.bf16.msra.mxu3 %v1665_v20 }
  0x80   : > { %532 = vst [vmem:[#allocation2 + $0x78] sm:$0xff] %v2198_v17 }
  0x81   : > { %533 = vst [vmem:[#allocation2 + $0x28] sm:$0xff] %v2198_v17 }
  0x82   : > { %666 = vmatpush.bf16.msra.mxu0 %v1664_v21  ;;  %1753 = vmatpush.bf16.msra.mxu1 %v1664_v21 }
  0x83   : > { %1754 = vmatpush.bf16.msra.mxu2 %v1664_v21  ;;  %1755 = vmatpush.bf16.msra.mxu3 %v1664_v21 }
  0x86   : > { %667 = vmatpush.bf16.msra.mxu0 %v1663_v22  ;;  %1756 = vmatpush.bf16.msra.mxu1 %v1663_v22 }
  0x87   : > { %1757 = vmatpush.bf16.msra.mxu2 %v1663_v22  ;;  %1758 = vmatpush.bf16.msra.mxu3 %v1663_v22 }
  0x8a   : > { %668 = vmatpush.bf16.msra.mxu0 %v1662_v23  ;;  %1759 = vmatpush.bf16.msra.mxu1 %v1662_v23 }
  0x8b   : > { %1760 = vmatpush.bf16.msra.mxu2 %v1662_v23  ;;  %1761 = vmatpush.bf16.msra.mxu3 %v1662_v23 }
  0x8e   : > { %669 = vmatpush.bf16.msra.mxu0 %v1661_v24  ;;  %1762 = vmatpush.bf16.msra.mxu1 %v1661_v24 }
  0x8f   : > { %1763 = vmatpush.bf16.msra.mxu2 %v1661_v24  ;;  %1764 = vmatpush.bf16.msra.mxu3 %v1661_v24 }
  0x91   : > { %670 = vmatmul.bf16.vlgmr.msra.gmra.mxu0 %v1653_v25  ;;  %680 = vmatmul.bf16.vlgmr.msra.gmra.mxu1 %v1655_v26 }
  0x92   : > { %690 = vmatmul.bf16.vlgmr.msra.gmra.mxu2 %v1657_v27  ;;  %700 = vmatmul.bf16.vlgmr.msra.gmra.mxu3 %v1659_v28 }
  0xa1   : > { %675 = vmatmul.bf16.gmra.mxu0 %v1654_v29  ;;  %685 = vmatmul.bf16.gmra.mxu1 %v1656_v30 }
  0xa2   : > { %695 = vmatmul.bf16.gmra.mxu2 %v1658_v31  ;;  %705 = vmatmul.bf16.gmra.mxu3 %v1660_v32 }
 0x10e   : > { %v671_v33 = vpop.f32.mrf.mxu0  ;;  %v681_v34 = vpop.f32.mrf.mxu1 }
 0x10f   : > { %711 = vst [vmem:[#allocation3 + $0x28] sm:$0xff] %v671_v33 }
 0x110   : > { %715 = vst [vmem:[#allocation3 + $0x48] sm:$0xff] %v681_v34 }
 0x115   : > { %v691_v35 = vpop.f32.mrf.mxu2  ;;  %v701_v36 = vpop.f32.mrf.mxu3 }
 0x116   : > { %719 = vst [vmem:[#allocation3 + $0x20] sm:$0xff] %v691_v35  ;;  %v673_v37 = vpop.f32.mrf.mxu0  ;;  %v683_v38 = vpop.f32.mrf.mxu1 }
 0x117   : > { %723 = vst [vmem:[#allocation3] sm:$0xff] %v701_v36 }
 0x118   : > { %712 = vst [vmem:[#allocation3 + $0x68] sm:$0xff] %v673_v37 }
 0x119   : > { %716 = vst [vmem:[#allocation3 + $0x30] sm:$0xff] %v683_v38 }
 0x11d   : > { %v693_v39 = vpop.f32.mrf.mxu2  ;;  %v703_v40 = vpop.f32.mrf.mxu3 }
 0x11e   : > { %720 = vst [vmem:[#allocation3 + $0x78] sm:$0xff] %v693_v39  ;;  %v676_v41 = vpop.f32.mrf.mxu0  ;;  %v686_v42 = vpop.f32.mrf.mxu1 }
 0x11f   : > { %724 = vst [vmem:[#allocation3 + $0x8] sm:$0xff] %v703_v40 }
 0x120   : > { %713 = vst [vmem:[#allocation3 + $0x10] sm:$0xff] %v676_v41 }
 0x121   : > { %717 = vst [vmem:[#allocation3 + $0x70] sm:$0xff] %v686_v42 }
 0x125   : > { %v696_v43 = vpop.f32.mrf.mxu2  ;;  %v706_v44 = vpop.f32.mrf.mxu3 }
 0x126   : > { %721 = vst [vmem:[#allocation3 + $0x18] sm:$0xff] %v696_v43  ;;  %v678_v45 = vpop.f32.mrf.mxu0  ;;  %v688_v46 = vpop.f32.mrf.mxu1 }
 0x127   : > { %725 = vst [vmem:[#allocation3 + $0x60] sm:$0xff] %v706_v44 }
 0x128   : > { %714 = vst [vmem:[#allocation3 + $0x40] sm:$0xff] %v678_v45 }
 0x129   : > { %718 = vst [vmem:[#allocation3 + $0x38] sm:$0xff] %v688_v46 }
 0x12d   : > { %v698_v47 = vpop.f32.mrf.mxu2  ;;  %v708_v48 = vpop.f32.mrf.mxu3 }
 0x12e   : > { %722 = vst [vmem:[#allocation3 + $0x58] sm:$0xff] %v698_v47 }
 0x12f   : > { %726 = vst [vmem:[#allocation3 + $0x50] sm:$0xff] %v708_v48 }
 0x130 PF: > { %s2626_s11 = sld [smem:[#allocation20_spill]]  ;;  %v1677_v57 = vld [vmem:[%s2425_s16] sm:$0xff]  ;;  %v1679_v58 = vld [vmem:[%s2425_s16 + $0x10] sm:$0xff]  ;;  %v1678_v61 = vld [vmem:[%s2425_s16 + $0x8] sm:$0xff] }
 0x131   : > { %v1681_v59 = vld [vmem:[%s2425_s16 + $0x20] sm:$0xff]  ;;  %v1683_v60 = vld [vmem:[%s2425_s16 + $0x30] sm:$0xff]  ;;  %v1680_v62 = vld [vmem:[%s2425_s16 + $0x18] sm:$0xff] }
 0x132   : > { %v1682_v63 = vld [vmem:[%s2425_s16 + $0x28] sm:$0xff]  ;;  %v1684_v0 = vld [vmem:[%s2425_s16 + $0x38] sm:$0xff]  ;;  %v748_v1 = vld [vmem:[#allocation2 + $0x30] sm:$0xff] }
 0x133   : > { %v752_v2 = vld [vmem:[#allocation2 + $0x50] sm:$0xff]  ;;  %v756_v7 = vld [vmem:[#allocation2 + $0x40] sm:$0xff]  ;;  %v753_v10 = vld [vmem:[#allocation2 + $0x68] sm:$0xff] }
 0x134   : > { %v760_v8 = vld [vmem:[#allocation2 + $0x60] sm:$0xff]  ;;  %v761_v20 = vld [vmem:[#allocation2 + $0x70] sm:$0xff]  ;;  %v750_v21 = vld [vmem:[#allocation2 + $0x58] sm:$0xff] }
 0x135   : > { %v749_v9 = vld [vmem:[#allocation2] sm:$0xff]  ;;  %v754_v22 = vld [vmem:[#allocation2 + $0x8] sm:$0xff]  ;;  %v758_v31 = vld [vmem:[#allocation2 + $0x10] sm:$0xff] }
 0x136   : > { %s1547_s18 = sshll.u32 %s2626_s11, 7  ;;  %v757_v19 = vld [vmem:[#allocation2 + $0x20] sm:$0xff]  ;;  %v762_v32 = vld [vmem:[#allocation2 + $0x78] sm:$0xff]  ;;  %v755_v34 = vld [vmem:[#allocation2 + $0x48] sm:$0xff]  ;;  %p1613_p5 = scmp.ne.s32.totalorder %s2626_s11, 1 }
 0x137   : > { %s728_s12 = sshra.s32 %s1547_s18, 3  ;;  %v751_v33 = vld [vmem:[#allocation2 + $0x18] sm:$0xff]  ;;  %v763_v44 = vld [vmem:[#allocation2 + $0x28] sm:$0xff]  ;;  %s2627_s19 = sld [smem:[#allocation28_spill]] (!%p1613_p5) }
 0x138   : > { %s1548_s23 = sshll.u32 %s728_s12, 2  ;;  %v759_v43 = vld [vmem:[#allocation2 + $0x38] sm:$0xff] }
 0x139   : > { %s2467_s1 = scalar_lea.vmem [#allocation5], %s1548_s23 }
 0x13a   : > { %v1676_v49 = vld [vmem:[%s2467_s1 + $0x38] sm:$0xff]  ;;  %v1675_v50 = vld [vmem:[%s2467_s1 + $0x30] sm:$0xff]  ;;  %v1674_v51 = vld [vmem:[%s2467_s1 + $0x28] sm:$0xff] }
 0x13b   : > { %876 = vmatpush.bf16.msra.mxu0 %v1676_v49  ;;  %1765 = vmatpush.bf16.msra.mxu1 %v1676_v49  ;;  %v1673_v52 = vld [vmem:[%s2467_s1 + $0x20] sm:$0xff]  ;;  %v1672_v53 = vld [vmem:[%s2467_s1 + $0x18] sm:$0xff]  ;;  %v1671_v54 = vld [vmem:[%s2467_s1 + $0x10] sm:$0xff] }
 0x13c   : > { %1766 = vmatpush.bf16.msra.mxu2 %v1676_v49  ;;  %1767 = vmatpush.bf16.msra.mxu3 %v1676_v49  ;;  %v1670_v55 = vld [vmem:[%s2467_s1 + $0x8] sm:$0xff]  ;;  %v1669_v56 = vld [vmem:[%s2467_s1] sm:$0xff] }
 0x13f   : > { %877 = vmatpush.bf16.msra.mxu0 %v1675_v50  ;;  %1768 = vmatpush.bf16.msra.mxu1 %v1675_v50 }
 0x140   : > { %1769 = vmatpush.bf16.msra.mxu2 %v1675_v50  ;;  %1770 = vmatpush.bf16.msra.mxu3 %v1675_v50 }
 0x143   : > { %878 = vmatpush.bf16.msra.mxu0 %v1674_v51  ;;  %1771 = vmatpush.bf16.msra.mxu1 %v1674_v51 }
 0x144   : > { %1772 = vmatpush.bf16.msra.mxu2 %v1674_v51  ;;  %1773 = vmatpush.bf16.msra.mxu3 %v1674_v51 }
 0x147   : > { %879 = vmatpush.bf16.msra.mxu0 %v1673_v52  ;;  %1774 = vmatpush.bf16.msra.mxu1 %v1673_v52 }
 0x148   : > { %1775 = vmatpush.bf16.msra.mxu2 %v1673_v52  ;;  %1776 = vmatpush.bf16.msra.mxu3 %v1673_v52 }
 0x14b   : > { %880 = vmatpush.bf16.msra.mxu0 %v1672_v53  ;;  %1777 = vmatpush.bf16.msra.mxu1 %v1672_v53 }
 0x14c   : > { %1778 = vmatpush.bf16.msra.mxu2 %v1672_v53  ;;  %1779 = vmatpush.bf16.msra.mxu3 %v1672_v53 }
 0x14f   : > { %881 = vmatpush.bf16.msra.mxu0 %v1671_v54  ;;  %1780 = vmatpush.bf16.msra.mxu1 %v1671_v54 }
 0x150   : > { %1781 = vmatpush.bf16.msra.mxu2 %v1671_v54  ;;  %1782 = vmatpush.bf16.msra.mxu3 %v1671_v54 }
 0x153   : > { %882 = vmatpush.bf16.msra.mxu0 %v1670_v55  ;;  %1783 = vmatpush.bf16.msra.mxu1 %v1670_v55 }
 0x154   : > { %1784 = vmatpush.bf16.msra.mxu2 %v1670_v55  ;;  %1785 = vmatpush.bf16.msra.mxu3 %v1670_v55 }
 0x157   : > { %883 = vmatpush.bf16.msra.mxu0 %v1669_v56  ;;  %1786 = vmatpush.bf16.msra.mxu1 %v1669_v56 }
 0x158   : > { %1787 = vmatpush.bf16.msra.mxu2 %v1669_v56  ;;  %1788 = vmatpush.bf16.msra.mxu3 %v1669_v56 }
 0x15a   : > { %884 = vmatmul.bf16.vlgmr.msra.gmra.mxu0 %v1677_v57  ;;  %894 = vmatmul.bf16.vlgmr.msra.gmra.mxu1 %v1679_v58 }
 0x15b   : > { %904 = vmatmul.bf16.vlgmr.msra.gmra.mxu2 %v1681_v59  ;;  %914 = vmatmul.bf16.vlgmr.msra.gmra.mxu3 %v1683_v60 }
 0x16a   : > { %889 = vmatmul.bf16.gmra.mxu0 %v1678_v61  ;;  %899 = vmatmul.bf16.gmra.mxu1 %v1680_v62 }
 0x16b   : > { %909 = vmatmul.bf16.gmra.mxu2 %v1682_v63  ;;  %919 = vmatmul.bf16.gmra.mxu3 %v1684_v0 }
 0x1d7   : > { %v885_v3 = vpop.f32.mrf.mxu0  ;;  %v895_v4 = vpop.f32.mrf.mxu1 }
 0x1d8   : > { %v925_v5 = vadd.f32 %v885_v3, %v748_v1  ;;  %v929_v6 = vadd.f32 %v895_v4, %v752_v2 }
 0x1da   : > { %941 = vst [vmem:[#allocation2 + $0x30] sm:$0xff] %v925_v5 }
 0x1db   : > { %945 = vst [vmem:[#allocation2 + $0x50] sm:$0xff] %v929_v6 }
 0x1de   : > { %v905_v11 = vpop.f32.mrf.mxu2  ;;  %v915_v12 = vpop.f32.mrf.mxu3 }
 0x1df   : > { %v933_v13 = vadd.f32 %v905_v11, %v756_v7  ;;  %v937_v14 = vadd.f32 %v915_v12, %v760_v8  ;;  %v887_v15 = vpop.f32.mrf.mxu0  ;;  %v897_v16 = vpop.f32.mrf.mxu1 }
 0x1e0   : > { %v926_v17 = vadd.f32 %v887_v15, %v749_v9  ;;  %v930_v18 = vadd.f32 %v897_v16, %v753_v10 }
 0x1e1   : > { %949 = vst [vmem:[#allocation2 + $0x40] sm:$0xff] %v933_v13 }
 0x1e2   : > { %953 = vst [vmem:[#allocation2 + $0x60] sm:$0xff] %v937_v14 }
 0x1e3   : > { %942 = vst [vmem:[#allocation2] sm:$0xff] %v926_v17 }
 0x1e4   : > { %946 = vst [vmem:[#allocation2 + $0x68] sm:$0xff] %v930_v18 }
 0x1e6   : > { %v907_v23 = vpop.f32.mrf.mxu2  ;;  %v917_v24 = vpop.f32.mrf.mxu3 }
 0x1e7   : > { %v934_v25 = vadd.f32 %v907_v23, %v757_v19  ;;  %v938_v26 = vadd.f32 %v917_v24, %v761_v20  ;;  %v890_v27 = vpop.f32.mrf.mxu0  ;;  %v900_v28 = vpop.f32.mrf.mxu1 }
 0x1e8   : > { %v927_v29 = vadd.f32 %v890_v27, %v750_v21  ;;  %v931_v30 = vadd.f32 %v900_v28, %v754_v22 }
 0x1e9   : > { %950 = vst [vmem:[#allocation2 + $0x20] sm:$0xff] %v934_v25 }
 0x1ea   : > { %954 = vst [vmem:[#allocation2 + $0x70] sm:$0xff] %v938_v26 }
 0x1eb   : > { %943 = vst [vmem:[#allocation2 + $0x58] sm:$0xff] %v927_v29 }
 0x1ec   : > { %947 = vst [vmem:[#allocation2 + $0x8] sm:$0xff] %v931_v30 }
 0x1ee   : > { %v910_v35 = vpop.f32.mrf.mxu2  ;;  %v920_v36 = vpop.f32.mrf.mxu3 }
 0x1ef   : > { %v935_v37 = vadd.f32 %v910_v35, %v758_v31  ;;  %v939_v38 = vadd.f32 %v920_v36, %v762_v32  ;;  %v892_v39 = vpop.f32.mrf.mxu0  ;;  %v902_v40 = vpop.f32.mrf.mxu1 }
 0x1f0   : > { %v928_v41 = vadd.f32 %v892_v39, %v751_v33  ;;  %v932_v42 = vadd.f32 %v902_v40, %v755_v34 }
 0x1f1   : > { %951 = vst [vmem:[#allocation2 + $0x10] sm:$0xff] %v935_v37 }
 0x1f2   : > { %955 = vst [vmem:[#allocation2 + $0x78] sm:$0xff] %v939_v38 }
 0x1f3   : > { %944 = vst [vmem:[#allocation2 + $0x18] sm:$0xff] %v928_v41 }
 0x1f4   : > { %948 = vst [vmem:[#allocation2 + $0x48] sm:$0xff] %v932_v42 }
 0x1f6   : > { %v912_v45 = vpop.f32.mrf.mxu2  ;;  %v922_v46 = vpop.f32.mrf.mxu3  ;;  %960 = sbr.rel (%p1613_p5) target bundleno = 812 (0x32c), region = 113 }
 0x1f7   : > { %v936_v47 = vadd.f32 %v912_v45, %v759_v43  ;;  %v940_v48 = vadd.f32 %v922_v46, %v763_v44 }
 0x1f9   : > { %952 = vst [vmem:[#allocation2 + $0x38] sm:$0xff] %v936_v47 }
 0x1fa   : > { %956 = vst [vmem:[#allocation2 + $0x28] sm:$0xff] %v940_v48 }
 0x1fb   : > { %v989_v49 = vld [vmem:[%s2453_s24 + $0x60] sm:$0xff]  ;;  %v2199_v52 = vmov 0   ;;  %v990_v53 = vld [vmem:[%s2453_s24 + $0x68] sm:$0xff]  ;;  %v1692_v56 = vld [vmem:[#allocation11 + $0x38] sm:$0xff] }
 0x1fc   : > { %v985_v50 = vld [vmem:[%s2453_s24 + $0x40] sm:$0xff]  ;;  %1943 = vset.pattern.permute.xlu2 %v2199_v52  ;;  %1942 = vset.pattern.permute.xlu1 %v2199_v52  ;;  %v986_v54 = vld [vmem:[%s2453_s24 + $0x48] sm:$0xff]  ;;  %v987_v59 = vld [vmem:[%s2453_s24 + $0x50] sm:$0xff] }
 0x1fd   : > { %v977_v51 = vld [vmem:[%s2453_s24] sm:$0xff]  ;;  %1941 = vset.pattern.permute.xlu0 %v2199_v52  ;;  %1055 = vperm.xlu1 %1942, %v989_v49   ;;  %v978_v55 = vld [vmem:[%s2453_s24 + $0x8] sm:$0xff]  ;;  %v991_v60 = vld [vmem:[%s2453_s24 + $0x70] sm:$0xff] }
 0x1fe   : > { %1035 = vperm.xlu0 %1941, %v985_v50   ;;  %995 = vperm.xlu2 %1943, %v977_v51   ;;  %v982_v57 = vld [vmem:[%s2453_s24 + $0x28] sm:$0xff]  ;;  %v981_v58 = vld [vmem:[%s2453_s24 + $0x20] sm:$0xff]  ;;  %v988_v61 = vld [vmem:[%s2453_s24 + $0x58] sm:$0xff] }
 0x1ff   : > { %1177 = vmatpush.bf16.msra.mxu0 %v1692_v56  ;;  %1790 = vmatpush.bf16.msra.mxu2 %v1692_v56  ;;  %v992_v62 = vld [vmem:[%s2453_s24 + $0x78] sm:$0xff]  ;;  %v979_v0 = vld [vmem:[%s2453_s24 + $0x10] sm:$0xff]  ;;  %v1690_v4 = vld [vmem:[#allocation11 + $0x28] sm:$0xff] }
 0x200   : > { %1791 = vmatpush.bf16.msra.mxu3 %v1692_v56  ;;  %1789 = vmatpush.bf16.msra.mxu1 %v1692_v56  ;;  %v980_v63 = vld [vmem:[%s2453_s24 + $0x18] sm:$0xff]  ;;  %v983_v1 = vld [vmem:[%s2453_s24 + $0x30] sm:$0xff]  ;;  %v1689_v5 = vld [vmem:[#allocation11 + $0x20] sm:$0xff] }
 0x201   : > { %v984_v2 = vld [vmem:[%s2453_s24 + $0x38] sm:$0xff]  ;;  %v1691_v3 = vld [vmem:[#allocation11 + $0x30] sm:$0xff]  ;;  %v1686_v8 = vld [vmem:[#allocation11 + $0x8] sm:$0xff] }
 0x202   : > { %v1688_v6 = vld [vmem:[#allocation11 + $0x18] sm:$0xff]  ;;  %v1687_v7 = vld [vmem:[#allocation11 + $0x10] sm:$0xff]  ;;  %v1685_v9 = vld [vmem:[#allocation11] sm:$0xff] }
 0x203   : > { %1178 = vmatpush.bf16.msra.mxu0 %v1691_v3  ;;  %1793 = vmatpush.bf16.msra.mxu2 %v1691_v3  ;;  %v961_v11 = vld [vmem:[#allocation2 + $0x30] sm:$0xff]  ;;  %v962_v12 = vld [vmem:[#allocation2] sm:$0xff]  ;;  %v966_v32 = vld [vmem:[#allocation2 + $0x68] sm:$0xff] }
 0x204   : > { %1794 = vmatpush.bf16.msra.mxu3 %v1691_v3  ;;  %1792 = vmatpush.bf16.msra.mxu1 %v1691_v3  ;;  %v973_v19 = vld [vmem:[#allocation2 + $0x60] sm:$0xff]  ;;  %v974_v20 = vld [vmem:[#allocation2 + $0x70] sm:$0xff]  ;;  %v976_v39 = vld [vmem:[#allocation2 + $0x28] sm:$0xff] }
 0x205   : > { %1060 = vperm.xlu1 %1942, %v990_v53   ;;  %v969_v22 = vld [vmem:[#allocation2 + $0x40] sm:$0xff]  ;;  %v965_v33 = vld [vmem:[#allocation2 + $0x50] sm:$0xff]  ;;  %v975_v40 = vld [vmem:[#allocation2 + $0x78] sm:$0xff] }
 0x206   : > { %1040 = vperm.xlu0 %1941, %v986_v54   ;;  %1000 = vperm.xlu2 %1943, %v978_v55   ;;  %v970_v23 = vld [vmem:[#allocation2 + $0x20] sm:$0xff]  ;;  %v971_v41 = vld [vmem:[#allocation2 + $0x10] sm:$0xff]  ;;  %v972_v42 = vld [vmem:[#allocation2 + $0x38] sm:$0xff] }
 0x207   : > { %1179 = vmatpush.bf16.msra.mxu0 %v1690_v4  ;;  %1796 = vmatpush.bf16.msra.mxu2 %v1690_v4  ;;  %v964_v52 = vld [vmem:[#allocation2 + $0x18] sm:$0xff] }
 0x208   : > { %1797 = vmatpush.bf16.msra.mxu3 %v1690_v4  ;;  %1795 = vmatpush.bf16.msra.mxu1 %v1690_v4  ;;  %v963_v53 = vld [vmem:[#allocation2 + $0x58] sm:$0xff] }
 0x20b   : > { %1180 = vmatpush.bf16.msra.mxu0 %v1689_v5  ;;  %1799 = vmatpush.bf16.msra.mxu2 %v1689_v5 }
 0x20c   : > { %1800 = vmatpush.bf16.msra.mxu3 %v1689_v5  ;;  %1798 = vmatpush.bf16.msra.mxu1 %v1689_v5  ;;  %v2505_v5 = vld [vmem:[%s2627_s19] ss:$0 sm:$0xff] }
 0x20d   : > { %1020 = vperm.xlu1 %1942, %v982_v57  }
 0x20e   : > { %1015 = vperm.xlu0 %1941, %v981_v58   ;;  %1045 = vperm.xlu2 %1943, %v987_v59  }
 0x20f   : > { %1181 = vmatpush.bf16.msra.mxu0 %v1688_v6  ;;  %1802 = vmatpush.bf16.msra.mxu2 %v1688_v6 }
 0x210   : > { %1803 = vmatpush.bf16.msra.mxu3 %v1688_v6  ;;  %1801 = vmatpush.bf16.msra.mxu1 %v1688_v6  ;;  %v1114_v6 = vld [vmem:[#allocation3 + $0x68] sm:$0xff] }
 0x213   : > { %1182 = vmatpush.bf16.msra.mxu0 %v1687_v7  ;;  %1805 = vmatpush.bf16.msra.mxu2 %v1687_v7 }
 0x214   : > { %1806 = vmatpush.bf16.msra.mxu3 %v1687_v7  ;;  %1804 = vmatpush.bf16.msra.mxu1 %v1687_v7 }
 0x215   : > { %1065 = vperm.xlu1 %1942, %v991_v60   ;;  %v967_v60 = vld [vmem:[#allocation2 + $0x8] sm:$0xff] }
 0x216   : > { %1050 = vperm.xlu0 %1941, %v988_v61   ;;  %1070 = vperm.xlu2 %1943, %v992_v62   ;;  %v968_v61 = vld [vmem:[#allocation2 + $0x48] sm:$0xff] }
 0x217   : > { %1183 = vmatpush.bf16.msra.mxu0 %v1686_v8  ;;  %1808 = vmatpush.bf16.msra.mxu2 %v1686_v8 }
 0x218   : > { %1809 = vmatpush.bf16.msra.mxu3 %v1686_v8  ;;  %1807 = vmatpush.bf16.msra.mxu1 %v1686_v8 }
 0x21b   : > { %1184 = vmatpush.bf16.msra.mxu0 %v1685_v9  ;;  %1811 = vmatpush.bf16.msra.mxu2 %v1685_v9 }
 0x21c   : > { %1812 = vmatpush.bf16.msra.mxu3 %v1685_v9  ;;  %1810 = vmatpush.bf16.msra.mxu1 %v1685_v9 }
 0x21d   : > { %1010 = vperm.xlu1 %1942, %v980_v63  }
 0x21e   : > { %1005 = vperm.xlu0 %1941, %v979_v0   ;;  %1025 = vperm.xlu2 %1943, %v983_v1  }
 0x226   : > { %1030 = vperm.xlu0 %1941, %v984_v2   ;;  %v1113_v2 = vld [vmem:[#allocation3 + $0x28] sm:$0xff] }
 0x258   : > { %v996_v10 = vpop.permute.xlu2 %995 }
 0x259   : > { %v1073_v13 = vmul.f32 %v996_v10, %v961_v11 }
 0x260   : > { %v1001_v14 = vpop.permute.xlu2 %1000 }
 0x261   : > { %v1074_v15 = vmul.f32 %v1001_v14, %v962_v12 }
 0x263   : > { %v1089_v16 = vpack.c.bf16 %v1074_v15, %v1073_v13 }
 0x265   : > { %1185 = vmatmul.bf16.vlgmr.msra.gmra.mxu0 %v1089_v16  ;;  %v1125_v16 = vld [vmem:[#allocation3] sm:$0xff] }
 0x268   : > { %v1046_v31 = vpop.permute.xlu2 %1045 }
 0x269   : > { %v1083_v48 = vmul.f32 %v1046_v31, %v971_v41 }
 0x26f   : > { %v1056_v17 = vpop.permute.xlu1 %1055 }
 0x270   : > { %v1036_v18 = vpop.permute.xlu0 %1035  ;;  %v1085_v21 = vmul.f32 %v1056_v17, %v973_v19  ;;  %v1071_v43 = vpop.permute.xlu2 %1070  ;;  %v1121_v17 = vld [vmem:[#allocation3 + $0x20] sm:$0xff] }
 0x271   : > { %v1081_v27 = vmul.f32 %v1036_v18, %v969_v22  ;;  %v1088_v45 = vmul.f32 %v1071_v43, %v976_v39  ;;  %v1126_v22 = vld [vmem:[#allocation3 + $0x8] sm:$0xff] }
 0x277   : > { %v1061_v24 = vpop.permute.xlu1 %1060 }
 0x278   : > { %v1086_v25 = vmul.f32 %v1061_v24, %v974_v20  ;;  %v1041_v26 = vpop.permute.xlu0 %1040  ;;  %v1026_v59 = vpop.permute.xlu2 %1025  ;;  %v1117_v20 = vld [vmem:[#allocation3 + $0x48] sm:$0xff] }
 0x279   : > { %v1082_v28 = vmul.f32 %v1041_v26, %v970_v23  ;;  %v1079_v63 = vmul.f32 %v1026_v59, %v967_v60  ;;  %v1122_v23 = vld [vmem:[#allocation3 + $0x78] sm:$0xff] }
 0x27a   : > { %v1095_v29 = vpack.c.bf16 %v1086_v25, %v1085_v21 }
 0x27b   : > { %v1093_v30 = vpack.c.bf16 %v1082_v28, %v1081_v27 }
 0x27c   : > { %1215 = vmatmul.bf16.vlgmr.msra.gmra.mxu3 %v1095_v29  ;;  %v1118_v29 = vld [vmem:[#allocation3 + $0x30] sm:$0xff] }
 0x27d   : > { %1205 = vmatmul.bf16.vlgmr.msra.gmra.mxu2 %v1093_v30 }
 0x27f   : > { %v1021_v34 = vpop.permute.xlu1 %1020 }
 0x280   : > { %v1078_v35 = vmul.f32 %v1021_v34, %v966_v32  ;;  %v1016_v36 = vpop.permute.xlu0 %1015 }
 0x281   : > { %v1077_v37 = vmul.f32 %v1016_v36, %v965_v33 }
 0x283   : > { %v1091_v38 = vpack.c.bf16 %v1078_v35, %v1077_v37 }
 0x285   : > { %1195 = vmatmul.bf16.vlgmr.msra.gmra.mxu1 %v1091_v38 }
 0x287   : > { %v1066_v44 = vpop.permute.xlu1 %1065 }
 0x288   : > { %v1087_v46 = vmul.f32 %v1066_v44, %v975_v40  ;;  %v1051_v47 = vpop.permute.xlu0 %1050 }
 0x289   : > { %v1084_v49 = vmul.f32 %v1051_v47, %v972_v42 }
 0x28a   : > { %v1096_v50 = vpack.c.bf16 %v1088_v45, %v1087_v46 }
 0x28b   : > { %v1094_v51 = vpack.c.bf16 %v1084_v49, %v1083_v48  ;;  %v1127_v49 = vld [vmem:[#allocation3 + $0x60] sm:$0xff] }
 0x28c   : > { %1220 = vmatmul.bf16.gmra.mxu3 %v1096_v50  ;;  %v1123_v50 = vld [vmem:[#allocation3 + $0x18] sm:$0xff] }
 0x28d   : > { %1210 = vmatmul.bf16.gmra.mxu2 %v1094_v51 }
 0x28f   : > { %v1011_v54 = vpop.permute.xlu1 %1010 }
 0x290   : > { %v1076_v55 = vmul.f32 %v1011_v54, %v964_v52  ;;  %v1006_v56 = vpop.permute.xlu0 %1005 }
 0x291   : > { %v1075_v57 = vmul.f32 %v1006_v56, %v963_v53  ;;  %v1115_v53 = vld [vmem:[#allocation3 + $0x10] sm:$0xff]  ;;  %v1124_v56 = vld [vmem:[#allocation3 + $0x58] sm:$0xff] }
 0x293   : > { %v1090_v58 = vpack.c.bf16 %v1076_v55, %v1075_v57  ;;  %v1128_v55 = vld [vmem:[#allocation3 + $0x50] sm:$0xff] }
 0x295   : > { %1190 = vmatmul.bf16.gmra.mxu0 %v1090_v58 }
 0x298   : > { %v1031_v62 = vpop.permute.xlu0 %1030 }
 0x299   : > { %v1080_v0 = vmul.f32 %v1031_v62, %v968_v61  ;;  %v1116_v62 = vld [vmem:[#allocation3 + $0x40] sm:$0xff] }
 0x29b   : > { %v1092_v1 = vpack.c.bf16 %v1080_v0, %v1079_v63 }
 0x29d   : > { %1200 = vmatmul.bf16.gmra.mxu1 %v1092_v1 }
 0x2e2   : > { %v1186_v3 = vpop.f32.mrf.mxu0 }
 0x2e3   : > { %v1187_v4 = vadd.f32 %v1186_v3, %v1113_v2 }
 0x2e5   : > { %v1230_v7 = vadd.f32 %v2505_v5, %v1187_v4 }
 0x2e7   : > { %v1246_v10 = vmax.f32 %v1230_v7, 0.0 }
 0x2ea   : > { %v1188_v8 = vpop.f32.mrf.mxu0 }
 0x2eb   : > { %v1189_v9 = vadd.f32 %v1188_v8, %v1114_v6 }
 0x2ed   : > { %v1231_v11 = vadd.f32 %v2505_v5, %v1189_v9 }
 0x2ef   : > { %v1247_v12 = vmax.f32 %v1231_v11, 0.0 }
 0x2f1   : > { %v1697_v13 = vpack.c.bf16 %v1247_v12, %v1246_v10  ;;  %v1119_v10 = vld [vmem:[#allocation3 + $0x70] sm:$0xff] }
 0x2f3   : > { %1698 = vst [vmem:[%s2455_s14] sm:$0xff] %v1697_v13  }
 0x2ff   : > { %v1216_v14 = vpop.f32.mrf.mxu3 }
 0x300   : > { %v1206_v15 = vpop.f32.mrf.mxu2  ;;  %v1217_v19 = vadd.f32 %v1216_v14, %v1125_v16 }
 0x301   : > { %v1207_v21 = vadd.f32 %v1206_v15, %v1121_v17 }
 0x302   : > { %v1196_v18 = vpop.f32.mrf.mxu1  ;;  %v1242_v26 = vadd.f32 %v2505_v5, %v1217_v19  ;;  %v1120_v19 = vld [vmem:[#allocation3 + $0x38] sm:$0xff] }
 0x303   : > { %v1197_v24 = vadd.f32 %v1196_v18, %v1117_v20  ;;  %v1238_v30 = vadd.f32 %v2505_v5, %v1207_v21 }
 0x304   : > { %v1258_v37 = vmax.f32 %v1242_v26, 0.0 }
 0x305   : > { %v1234_v34 = vadd.f32 %v2505_v5, %v1197_v24  ;;  %v1254_v39 = vmax.f32 %v1238_v30, 0.0 }
 0x307   : > { %v1218_v25 = vpop.f32.mrf.mxu3  ;;  %v1250_v43 = vmax.f32 %v1234_v34, 0.0 }
 0x308   : > { %v1208_v27 = vpop.f32.mrf.mxu2  ;;  %v1219_v28 = vadd.f32 %v1218_v25, %v1126_v22 }
 0x309   : > { %v1209_v31 = vadd.f32 %v1208_v27, %v1122_v23 }
 0x30a   : > { %v1243_v32 = vadd.f32 %v2505_v5, %v1219_v28  ;;  %v1198_v33 = vpop.f32.mrf.mxu1 }
 0x30b   : > { %v1239_v35 = vadd.f32 %v2505_v5, %v1209_v31  ;;  %v1199_v36 = vadd.f32 %v1198_v33, %v1118_v29 }
 0x30c   : > { %v1259_v38 = vmax.f32 %v1243_v32, 0.0 }
 0x30d   : > { %v1255_v40 = vmax.f32 %v1239_v35, 0.0  ;;  %v1235_v41 = vadd.f32 %v2505_v5, %v1199_v36 }
 0x30e   : > { %v1727_v42 = vpack.c.bf16 %v1259_v38, %v1258_v37 }
 0x30f   : > { %v1717_v44 = vpack.c.bf16 %v1255_v40, %v1254_v39  ;;  %v1251_v45 = vmax.f32 %v1235_v41, 0.0  ;;  %v1221_v46 = vpop.f32.mrf.mxu3 }
 0x310   : > { %1739 = vst [vmem:[%s2455_s14 + $0x30] sm:$0xff] %v1727_v42   ;;  %v1211_v47 = vpop.f32.mrf.mxu2  ;;  %v1222_v52 = vadd.f32 %v1221_v46, %v1127_v49 }
 0x311   : > { %1737 = vst [vmem:[%s2455_s14 + $0x20] sm:$0xff] %v1717_v44   ;;  %v1707_v48 = vpack.c.bf16 %v1251_v45, %v1250_v43  ;;  %v1212_v54 = vadd.f32 %v1211_v47, %v1123_v50 }
 0x312   : > { %v1191_v51 = vpop.f32.mrf.mxu0  ;;  %v1244_v59 = vadd.f32 %v2505_v5, %v1222_v52 }
 0x313   : > { %1735 = vst [vmem:[%s2455_s14 + $0x10] sm:$0xff] %v1707_v48   ;;  %v1192_v57 = vadd.f32 %v1191_v51, %v1115_v53  ;;  %v1240_v63 = vadd.f32 %v2505_v5, %v1212_v54 }
 0x314   : > { %v1260_v8 = vmax.f32 %v1244_v59, 0.0 }
 0x315   : > { %v1232_v4 = vadd.f32 %v2505_v5, %v1192_v57  ;;  %v1256_v11 = vmax.f32 %v1240_v63, 0.0 }
 0x317   : > { %v1223_v58 = vpop.f32.mrf.mxu3  ;;  %v1248_v15 = vmax.f32 %v1232_v4, 0.0 }
 0x318   : > { %v1213_v60 = vpop.f32.mrf.mxu2  ;;  %v1224_v61 = vadd.f32 %v1223_v58, %v1128_v55 }
 0x319   : > { %v1214_v0 = vadd.f32 %v1213_v60, %v1124_v56 }
 0x31a   : > { %v1245_v1 = vadd.f32 %v2505_v5, %v1224_v61  ;;  %v1193_v2 = vpop.f32.mrf.mxu0  ;;  %v1201_v3 = vpop.f32.mrf.mxu1 }
 0x31b   : > { %v1241_v6 = vadd.f32 %v2505_v5, %v1214_v0  ;;  %v1194_v7 = vadd.f32 %v1193_v2, %v1116_v62  ;;  %v1202_v18 = vadd.f32 %v1201_v3, %v1119_v10 }
 0x31c   : > { %v1261_v9 = vmax.f32 %v1245_v1, 0.0 }
 0x31d   : > { %v1257_v12 = vmax.f32 %v1241_v6, 0.0  ;;  %v1233_v13 = vadd.f32 %v2505_v5, %v1194_v7  ;;  %v1236_v22 = vadd.f32 %v2505_v5, %v1202_v18 }
 0x31e   : > { %v1732_v14 = vpack.c.bf16 %v1261_v9, %v1260_v8 }
 0x31f   : > { %v1722_v16 = vpack.c.bf16 %v1257_v12, %v1256_v11  ;;  %v1249_v17 = vmax.f32 %v1233_v13, 0.0  ;;  %v1252_v25 = vmax.f32 %v1236_v22, 0.0 }
 0x320   : > { %1740 = vst [vmem:[%s2455_s14 + $0x38] sm:$0xff] %v1732_v14  }
 0x321   : > { %1738 = vst [vmem:[%s2455_s14 + $0x28] sm:$0xff] %v1722_v16   ;;  %v1702_v20 = vpack.c.bf16 %v1249_v17, %v1248_v15 }
 0x322   : > { %v1203_v21 = vpop.f32.mrf.mxu1 }
 0x323   : > { %1734 = vst [vmem:[%s2455_s14 + $0x8] sm:$0xff] %v1702_v20   ;;  %v1204_v23 = vadd.f32 %v1203_v21, %v1120_v19 }
 0x325   : > { %v1237_v24 = vadd.f32 %v2505_v5, %v1204_v23 }
 0x327   : > { %v1253_v26 = vmax.f32 %v1237_v24, 0.0 }
 0x329   : > { %v1712_v27 = vpack.c.bf16 %v1253_v26, %v1252_v25 }
 0x32b   : > { %1736 = vst [vmem:[%s2455_s14 + $0x18] sm:$0xff] %v1712_v27  }
 0x32c PF: > { %s1693_s17 = sshll.u32 %s2177_s30, 6  ;;  %s2629_s6 = sld [smem:[#allocation29_spill]] }
 0x32d   : > { %s1307_s22 = sshll.u32 %s2455_s14, 4  ;;  %s1295_s21 = scalar_lea.sflag [#allocation7], %s452_s29  ;;  %s1308_s22 = int_to_ptr.vmem [resolvable:$true] %s1307_s22 }
 0x332   : > { %s1306_s7 = scalar_lea.hbm %s2629_s6, %s1693_s17  ;;  %s2083_s30 = scalar_lea.hbm %s2629_s6, 128 }
 0x333   : > { %s1309_s24 = sshll.u32 %s1306_s7, 4  ;;  %s1310_s24 = int_to_ptr.hbm [resolvable:$true] %s1309_s24 }
 0x334   : > { %s2077_s11 = sshra.s32 %s1310_s24, 4  ;;  %s2078_s11 = int_to_ptr.hbm [resolvable:$true] %s2077_s11 }
 0x335   : > { %s2079_s18 = scalar_lea.hbm %s2078_s11, 64  ;;  %p2084_p3 = scmp.lt.s32.totalorder %s2078_s11, %s2629_s6 }
 0x336   : > { %p2080_p9 = scmp.ne.s32.totalorder %s2078_s11, %s2079_s18  ;;  %p2085_p11 = scmp.lt.s32.totalorder %s2083_s30, %s2079_s18 }
 0x338   : > { %p2081_p6 = pnand %p2080_p9, %p2347_p13  ;;  %p2086_p7 = por %p2085_p11, %p2084_p3 }
 0x33a   : > { %p2082_p10 = pneg %p2081_p6 }
 0x33c   : > { %p2087_p8 = pnand %p2086_p7, %p2082_p10 }
 0x33e   : > { %2090 = shalt.err (!%p2087_p8)
}
 0x33f   : > { %s2200_s29 = smov 64   ;;  %s2201_s14 = smov 4  }
 0x340   : > { %1827 = dma.vmem_to_hbm [thread:$0]  (%p2347_p13), %s1308_s22, 1024, %s1310_s24, %s1295_s21, %s2200_s29, %s2200_s29, %s2201_s14  }
 0x341 PF: > { %s2630_s16 = sld [smem:[#allocation19_spill]]  ;;  %p1849_p0 = scmp.ge.s32.totalorder %s2189_s10, 2 }
 0x343   : > { %p1840_p1 = pnand %p1849_p0, %p2356_p4 }
 0x345   : > { %p1841_p2 = pneg %p1840_p1 }
 0x347   : > { %s1324_s17 = sand.u32 1, %s2630_s16  }
 0x348   : > { %s1325_s15 = scalar_lea.sflag [#allocation7], %s1324_s17 }
 0x349   : > { %2148 = dma.done.wait (%p1841_p2), %s1325_s15, 1024  }
 0x34a   : > { %2150 = vsyncadd (%p1841_p2), %s1325_s15, 4294966272  ;;  %s25_s10 = sadd.s32 1, %s2189_s10   ;;  %s2632_s27 = sld [smem:[#allocation23_spill]] }
 0x34b   : > { %p22_p12 = scmp.ge.s32.totalorder %s25_s10, 6   ;;  %s2633_s20 = sld [smem:[#allocation24_spill]] }
 0x34c   : > { %s2634_s7 = sld [smem:[#allocation21_spill]]  ;;  %s2636_s24 = smov %s2157_s25 }
 0x34d   : > { %s2635_s22 = sld [smem:[#allocation22_spill]]  ;;  %s2637_s25 = smov %s2161_s26 }
 0x34e   : > { %s2641_s29 = smov %s2181_s8  ;;  %s2642_s30 = smov %s2185_s9 }
 0x34f   :  { %24 = sbr.rel (!%p22_p12) target bundleno = 14 (0xe), region = 167 }
 0x350   : > { %s2638_s26 = smov %s2632_s27  ;;  %s2639_s27 = smov %s2169_s28 }
 0x351   : > { %s2640_s28 = smov %s2633_s20 }
 0x352   : > { %s2643_s8 = smov %s2634_s7 }
 0x353   : > { %s2644_s9 = smov %s2635_s22 }
 0x354   :  { %1331 = vsyncpa [#allocation6], 1 }
 0x355   :  { %1333 = vsyncpa [#allocation6 + $0x1], 1 }
 0x356   :  { %1334 = vsyncpa [#allocation9], 1 }
 0x357   :  { %1336 = vsyncpa [#allocation9 + $0x1], 1 }
 0x358   :  { %1337 = vsyncpa [#allocation12], 1 }
 0x359   :  { %1338 = vsyncpa [#allocation7], 1 }
 0x35a   :  { %1340 = vsyncpa [#allocation7 + $0x1], 1 }

</bundles_post_ra>
